<compile_context>
chip_gen: v6e
topology: v6e:2x2x1
jax: 0.10.0
libtpu: 0.0.40
codegen_flags: <defaults>
</compile_context>

<pallas_src>
import numpy as np
import jax
import jax.numpy as jnp
from jax.experimental import pallas as pl
from jax.experimental.pallas import tpu as pltpu


def _round_up(x, m):
    return ((x + m - 1) // m) * m


def _is_pow2(n):
    return n > 0 and (n & (n - 1)) == 0


def _pad2(a, rows, cols):
    return jnp.pad(a, ((0, rows - a.shape[0]), (0, cols - a.shape[1])))


def _tpu_generation():
    """Best-effort TPU generation detection (4/5/6/7); 0 if unknown."""
    try:
        kind = jax.devices()[0].device_kind.lower()
    except Exception:
        return 0
    for g in (7, 6, 5, 4):
        if (f"v{g}" in kind) or (f"tpu{g}" in kind):
            return g
    return 0


def _tuning():
    gen = _tpu_generation()
    if gen in (5, 6):
        # 128 MiB physical VMEM, lower HBM BW -> bigger tiles, higher scoped limit.
        return dict(tm_target=1024, vmem_limit=64 * 1024 * 1024)
    # v7x (64 MiB VMEM per TensorCore) and unknown generations: stay conservative.
    return dict(tm_target=512, vmem_limit=32 * 1024 * 1024)


# ----------------------------------------------------------------------------
# Kernel 1: synthetic backbone hot path, transposed layout.
#   x: (Kp, TM) bf16 streamed;  w1t: (Ep, Kp) bf16 resident;  b1: (Ep, 1) f32
#   w2t: (Op, Ep) bf16 resident; b2: (Op, 1) f32;   out: (Op, TM) f32 lane-dense
# ----------------------------------------------------------------------------
def _backbone_kernel(x_ref, w1_ref, b1_ref, w2_ref, b2_ref, o_ref):
    h = jnp.dot(w1_ref[...], x_ref[...], preferred_element_type=jnp.float32)
    h = jnp.maximum(h + b1_ref[...], 0.0)                       # bias + ReLU in f32
    y = jnp.dot(w2_ref[...], h.astype(w2_ref.dtype),
                preferred_element_type=jnp.float32) + b2_ref[...]
    o_ref[...] = y.astype(o_ref.dtype)


def backbone_matmul(xt, w1t, b1, w2t, b2, *, tm, vmem_limit):
    kp, npad = xt.shape
    ep = w1t.shape[0]
    op = w2t.shape[0]
    flops = 2 * npad * (kp * ep + ep * op)
    bytes_accessed = (xt.size * 2 + w1t.size * 2 + w2t.size * 2
                      + b1.size * 4 + b2.size * 4 + op * npad * 4)
    return pl.pallas_call(
        _backbone_kernel,
        out_shape=jax.ShapeDtypeStruct((op, npad), jnp.float32),
        grid=(npad // tm,),
        in_specs=[
            pl.BlockSpec((kp, tm), lambda i: (0, i)),   # streamed activations
            pl.BlockSpec((ep, kp), lambda i: (0, 0)),   # resident weights
            pl.BlockSpec((ep, 1), lambda i: (0, 0)),
            pl.BlockSpec((op, ep), lambda i: (0, 0)),
            pl.BlockSpec((op, 1), lambda i: (0, 0)),
        ],
        out_specs=pl.BlockSpec((op, tm), lambda i: (0, i)),
        compiler_params=pltpu.CompilerParams(
            dimension_semantics=("parallel",),
            vmem_limit_bytes=vmem_limit),
        cost_estimate=pl.CostEstimate(flops=flops, transcendentals=0,
                                      bytes_accessed=bytes_accessed),
    )(xt, w1t, b1, w2t, b2)


# ----------------------------------------------------------------------------
# Kernel 2: fused bilinear upsample (W-interp then H-interp), per channel tile.
#   feat: (TB, Hp, Wp); wwt: (Wp, W); wh: (H, Hp); out: (TB, H, W) f32.
#   Intermediate (Hp, W) stays in VMEM values -> no HBM round trip; both dots
#   are lane-dense on W.
# ----------------------------------------------------------------------------
def _make_upsample_kernel(tb):
    def kernel(wwt_ref, wh_ref, feat_ref, o_ref):
        wwt = wwt_ref[...]                                    # (Wp, W)
        wh = wh_ref[...]                                      # (H, Hp)
        for t in range(tb):                                   # static unroll, tb <= 8
            mid = jnp.dot(feat_ref[t], wwt,
                          preferred_element_type=jnp.float32)          # (Hp, W)
            out = jnp.dot(wh, mid.astype(wh.dtype),
                          preferred_element_type=jnp.float32)          # (H, W)
            o_ref[t] = out.astype(o_ref.dtype)
    return kernel


def upsample(wwt, wh, feat, *, tb, vmem_limit):
    wp, w = wwt.shape
    h, hp = wh.shape
    bcp = feat.shape[0]
    flops = 2 * bcp * (hp * wp * w + hp * w * h)
    bytes_accessed = (feat.size * feat.dtype.itemsize
                      + wwt.size * wwt.dtype.itemsize
                      + wh.size * wh.dtype.itemsize
                      + bcp * h * w * 4)
    return pl.pallas_call(
        _make_upsample_kernel(tb),
        out_shape=jax.ShapeDtypeStruct((bcp, h, w), jnp.float32),
        grid=(bcp // tb,),
        in_specs=[
            pl.BlockSpec((wp, w), lambda c: (0, 0)),          # resident interp matrix
            pl.BlockSpec((h, hp), lambda c: (0, 0)),          # resident interp matrix
            pl.BlockSpec((tb, hp, wp), lambda c: (c, 0, 0)),  # channel tile
        ],
        out_specs=pl.BlockSpec((tb, h, w), lambda c: (c, 0, 0)),
        compiler_params=pltpu.CompilerParams(
            dimension_semantics=("parallel",),
            vmem_limit_bytes=vmem_limit),
        cost_estimate=pl.CostEstimate(flops=flops, transcendentals=0,
                                      bytes_accessed=bytes_accessed),
    )(wwt, wh, feat)


# ----------------------------------------------------------------------------
# Glue: im2col, interpolation-matrix construction, parameters, full forward
# ----------------------------------------------------------------------------
def _interp_matrix(in_size, out_size):
    """Row matrix reproducing torch F.interpolate bilinear, align_corners=False."""
    scale = in_size / out_size
    dst = np.arange(out_size, dtype=np.float64)
    src = (dst + 0.5) * scale - 0.5
    src = np.maximum(src, 0.0)
    x0 = np.minimum(np.floor(src).astype(np.int64), in_size - 1)
    x1 = np.minimum(x0 + 1, in_size - 1)
    lam = (src - x0).astype(np.float32)
    m = np.zeros((out_size, in_size), dtype=np.float32)
    m[np.arange(out_size), x0] += (1.0 - lam)
    m[np.arange(out_size), x1] += lam
    return jnp.asarray(m)


def init_params(key, in_ch, embed_dim, out_dim, patch, std=0.02):
    k1, k2 = jax.random.split(key, 2)
    # trunc_normal_(std=0.02, a=-2*std, b=2*std); biases zero (_initialize_weights)
    w_embed = std * jax.random.truncated_normal(k1, -2.0, 2.0,
                                                (embed_dim, in_ch, patch, patch),
                                                dtype=jnp.float32)
    w_head = std * jax.random.truncated_normal(k2, -2.0, 2.0,
                                               (out_dim, embed_dim, 1, 1),
                                               dtype=jnp.float32)
    return {
        "patch": patch,
        "w_embed": w_embed,
        "b_embed": jnp.zeros((embed_dim,), jnp.float32),
        "w_head": w_head,
        "b_head": jnp.zeros((out_dim,), jnp.float32),
    }


def baseline_net_forward(x, params):
    # x: (B, C, H, W)  NCHW
    B, C, H, W = x.shape
    P = params["patch"]
    Hp, Wp = H // P, W // P
    E = params["w_embed"].shape[0]
    O = params["w_head"].shape[0]

    cfg = _tuning()
    tm_target, vmem_limit = cfg["tm_target"], cfg["vmem_limit"]

    # --- backbone: patch-embed conv (stride == kernel) as im2col matmul -------
    # Transposed im2col: (K, N) with K = C*P*P (sublanes), N = B*Hp*Wp (lanes).
    # TODO(synk): at production weather resolutions, fold the patch extraction
    # into the backbone kernel (grid over (b, Hp-tile) with windowed BlockSpecs
    # on the raw NCHW input) instead of materializing this 6-D transpose in XLA.
    pt = x.reshape(B, C, Hp, P, Wp, P).transpose(1, 3, 5, 0, 2, 4)
    pt = pt.reshape(C * P * P, B * Hp * Wp)

    K, N = pt.shape
    Kp = _round_up(K, 16)
    Ep = _round_up(E, 8)
    Op = _round_up(O, 8)
    if N <= tm_target:
        TM = N
        Np = N
    else:
        TM = tm_target                       # multiple of 128 -> lane-dense tiles
        Np = _round_up(N, TM)

    xt = jnp.pad(pt, ((0, Kp - K), (0, Np - N))).astype(jnp.bfloat16)
    w1t = _pad2(params["w_embed"].reshape(E, -1), Ep, Kp).astype(jnp.bfloat16)   # (Ep,Kp)
    w2t = _pad2(params["w_head"].reshape(O, -1), Op, Ep).astype(jnp.bfloat16)    # (Op,Ep)
    b1 = jnp.pad(params["b_embed"], (0, Ep - E))[:, None]                        # (Ep,1) f32
    b2 = jnp.pad(params["b_head"], (0, Op - O))[:, None]                         # (Op,1) f32

    yt = backbone_matmul(xt, w1t, b1, w2t, b2, tm=TM, vmem_limit=vmem_limit)     # (Op,Np)

    # logits in NCHW; the (O,B)->(B,O) transpose acts on the tiny low-res tensor
    # (free for O == 1 since it only moves a size-1 axis).
    logits = yt[:O, :N].reshape(O, B, Hp, Wp).transpose(1, 0, 2, 3)              # (B,O,Hp,Wp)

    # --- BaselineNet.forward tail: resize only if spatial size changed --------
    if (Hp, Wp) == (H, W):
        return logits

    # bf16 interp operands only when the bilinear weights are exactly representable
    # (power-of-two upsample factors); f32 fallback otherwise.
    exact = (H % Hp == 0) and (W % Wp == 0) and _is_pow2(H // Hp) and _is_pow2(W // Wp)
    idtype = jnp.bfloat16 if exact else jnp.float32

    wwt = _interp_matrix(Wp, W).T.astype(idtype)      # (Wp, W)
    wh = _interp_matrix(Hp, H).astype(idtype)         # (H, Hp)

    BC = B * O
    TB = max(1, min(8, -(-BC // 2)))                  # cdiv(BC,2) capped at 8:
    BCp = _round_up(BC, TB)                           # no 4x zero-padding, >=2 grid steps
    feat = logits.reshape(BC, Hp, Wp)
    if BCp != BC:
        feat = jnp.pad(feat, ((0, BCp - BC), (0, 0), (0, 0)))
    feat = feat.astype(idtype)

    out = upsample(wwt, wh, feat, tb=TB, vmem_limit=vmem_limit)                  # (BCp,H,W)
    return out[:BC].reshape(B, O, H, W)


# Pure-JAX reference (same mixed precision) for a sanity check.
def reference_forward(x, params):
    B, C, H, W = x.shape
    P = params["patch"]
    Hp, Wp = H // P, W // P
    E = params["w_embed"].shape[0]
    O = params["w_head"].shape[0]
    pt = x.reshape(B, C, Hp, P, Wp, P).transpose(1, 3, 5, 0, 2, 4)
    pt = pt.reshape(C * P * P, B * Hp * Wp)
    w1t = params["w_embed"].reshape(E, -1)
    w2t = params["w_head"].reshape(O, -1)

    def r(a):  # emulate bf16 operand rounding with f32 accumulation
        return a.astype(jnp.bfloat16).astype(jnp.float32)

    h = jnp.maximum(r(w1t) @ r(pt) + params["b_embed"][:, None], 0.0)
    y = r(w2t) @ r(h) + params["b_head"][:, None]
    logits = y.reshape(O, B, Hp, Wp).transpose(1, 0, 2, 3)
    if (Hp, Wp) == (H, W):
        return logits
    exact = (H % Hp == 0) and (W % Wp == 0) and _is_pow2(H // Hp) and _is_pow2(W // Wp)
    ri = r if exact else (lambda a: a)
    wwt = _interp_matrix(Wp, W).T
    wh = _interp_matrix(Hp, H)
    feat = logits.reshape(B * O, Hp, Wp)
    mid = jnp.einsum('chw,wv->chv', ri(feat), ri(wwt))
    out = jnp.einsum('oh,chv->cov', ri(wh), ri(mid))
    return out.reshape(B, O, H, W)


# TODO(synk): the pretrained Aurora / ClimaX backbone weights cannot be loaded
# here; the backbone is a deterministic synthetic stand-in with the same
# structural forward (patch embed -> activation -> head -> bilinear upsample).

if __name__ == "__main__":
    key = jax.random.PRNGKey(0)
    kx, kp = jax.random.split(key)

    B, C, H, W = 2, 4, 16, 16          # input_dim=4, small img_size
    EMBED, OUT_DIM, PATCH = 32, 1, 4   # output_dim=1

    x = jax.random.normal(kx, (B, C, H, W), dtype=jnp.float32)
    params = init_params(kp, C, EMBED, OUT_DIM, PATCH)

    out = baseline_net_forward(x, params)
    out = jax.block_until_ready(out)

    assert out.shape == (B, OUT_DIM, H, W), out.shape
    assert bool(jnp.all(jnp.isfinite(out)))

    ref = jax.block_until_ready(reference_forward(x, params))
    max_err = float(jnp.max(jnp.abs(out - ref)))
    assert max_err < 2e-2, f"max abs error vs reference: {max_err}"

    print("KERNEL_OK")
</pallas_src>

<mosaic_0001>
module attributes {stable_mosaic.version = 11 : i64} {
  func.func @_backbone_kernel(%arg0: i32, %arg1: memref<64x32xbf16, #tpu.memory_space<vmem>>, %arg2: memref<32x64xbf16, #tpu.memory_space<vmem>>, %arg3: memref<32x1xf32, #tpu.memory_space<vmem>>, %arg4: memref<8x32xbf16, #tpu.memory_space<vmem>>, %arg5: memref<8x1xf32, #tpu.memory_space<vmem>>, %arg6: memref<8x32xf32, #tpu.memory_space<vmem>>) attributes {dimension_semantics = [#tpu.dimension_semantics<parallel>], iteration_bounds = array<i64: 1>, scalar_prefetch = 0 : i64, scratch_operands = 0 : i64, tpu.core_type = #tpu.core_type<tc>, window_params = [{transform_indices = @transform_0, window_bounds = array<i64: 64, 32>}, {pipeline_mode = #tpu.pipeline_mode<synchronous>, transform_indices = @transform_1, window_bounds = array<i64: 32, 64>}, {pipeline_mode = #tpu.pipeline_mode<synchronous>, transform_indices = @transform_2, window_bounds = array<i64: 32, 1>}, {pipeline_mode = #tpu.pipeline_mode<synchronous>, transform_indices = @transform_3, window_bounds = array<i64: 8, 32>}, {pipeline_mode = #tpu.pipeline_mode<synchronous>, transform_indices = @transform_4, window_bounds = array<i64: 8, 1>}, {transform_indices = @transform_5, window_bounds = array<i64: 8, 32>}]} {
    %c0 = arith.constant 0 : index
    %c0_0 = arith.constant 0 : index
    %0 = vector.load %arg2[%c0, %c0_0] : memref<32x64xbf16, #tpu.memory_space<vmem>>, vector<32x64xbf16>
    %c0_1 = arith.constant 0 : index
    %c0_2 = arith.constant 0 : index
    %1 = vector.load %arg1[%c0_1, %c0_2] : memref<64x32xbf16, #tpu.memory_space<vmem>>, vector<64x32xbf16>
    %cst = arith.constant dense<0.000000e+00> : vector<32x32xf32>
    %2 = tpu.matmul %0, %1, %cst {dimension_numbers = #tpu.dot_dimension_numbers<[1], [0], [0], [1], [0, 0, 1, 1], [], []>} : vector<32x64xbf16>, vector<64x32xbf16>, vector<32x32xf32> -> vector<32x32xf32>
    %c0_3 = arith.constant 0 : index
    %c0_4 = arith.constant 0 : index
    %3 = vector.load %arg3[%c0_3, %c0_4] : memref<32x1xf32, #tpu.memory_space<vmem>>, vector<32x1xf32>
    %4 = vector.broadcast %3 : vector<32x1xf32> to vector<32x32xf32>
    %5 = arith.addf %2, %4 : vector<32x32xf32>
    %cst_5 = arith.constant 0.000000e+00 : f32
    %6 = vector.broadcast %cst_5 : f32 to vector<32x32xf32>
    %7 = arith.maximumf %5, %6 : vector<32x32xf32>
    %c0_6 = arith.constant 0 : index
    %c0_7 = arith.constant 0 : index
    %8 = vector.load %arg4[%c0_6, %c0_7] : memref<8x32xbf16, #tpu.memory_space<vmem>>, vector<8x32xbf16>
    %9 = arith.truncf %7 : vector<32x32xf32> to vector<32x32xbf16>
    %cst_8 = arith.constant dense<0.000000e+00> : vector<8x32xf32>
    %10 = tpu.matmul %8, %9, %cst_8 {dimension_numbers = #tpu.dot_dimension_numbers<[1], [0], [0], [1], [0, 0, 1, 1], [], []>} : vector<8x32xbf16>, vector<32x32xbf16>, vector<8x32xf32> -> vector<8x32xf32>
    %c0_9 = arith.constant 0 : index
    %c0_10 = arith.constant 0 : index
    %11 = vector.load %arg5[%c0_9, %c0_10] : memref<8x1xf32, #tpu.memory_space<vmem>>, vector<8x1xf32>
    %12 = vector.broadcast %11 : vector<8x1xf32> to vector<8x32xf32>
    %13 = arith.addf %10, %12 : vector<8x32xf32>
    %c0_11 = arith.constant 0 : index
    %c0_12 = arith.constant 0 : index
    %14 = vector.load %arg6[%c0_11, %c0_12] : memref<8x32xf32, #tpu.memory_space<vmem>>, vector<8x32xf32>
    tpu.vector_store %arg6[%c0_11, %c0_12], %13 {strides = array<i32>} : memref<8x32xf32, #tpu.memory_space<vmem>>, vector<8x32xf32>,
    return
  }
  func.func @transform_0(%arg0: i32) -> (i32, i32) {
    %c0_i32 = arith.constant 0 : i32
    %c0_i32_0 = arith.constant 0 : i32
    return %c0_i32, %arg0 : i32, i32
  }
  func.func @transform_1(%arg0: i32) -> (i32, i32) {
    %c0_i32 = arith.constant 0 : i32
    %c0_i32_0 = arith.constant 0 : i32
    %c0_i32_1 = arith.constant 0 : i32
    return %c0_i32, %c0_i32_0 : i32, i32
  }
  func.func @transform_2(%arg0: i32) -> (i32, i32) {
    %c0_i32 = arith.constant 0 : i32
    %c0_i32_0 = arith.constant 0 : i32
    %c0_i32_1 = arith.constant 0 : i32
    return %c0_i32, %c0_i32_0 : i32, i32
  }
  func.func @transform_3(%arg0: i32) -> (i32, i32) {
    %c0_i32 = arith.constant 0 : i32
    %c0_i32_0 = arith.constant 0 : i32
    %c0_i32_1 = arith.constant 0 : i32
    return %c0_i32, %c0_i32_0 : i32, i32
  }
  func.func @transform_4(%arg0: i32) -> (i32, i32) {
    %c0_i32 = arith.constant 0 : i32
    %c0_i32_0 = arith.constant 0 : i32
    %c0_i32_1 = arith.constant 0 : i32
    return %c0_i32, %c0_i32_0 : i32, i32
  }
  func.func @transform_5(%arg0: i32) -> (i32, i32) {
    %c0_i32 = arith.constant 0 : i32
    %c0_i32_0 = arith.constant 0 : i32
    return %c0_i32, %arg0 : i32, i32
  }
}

</mosaic_0001>

<bundles_post_ra>
// kernel: tpu_custom_call.1
= control target key start
LH: loop header
LB: loop body
LE: loop exit
PB: predicated region body
PF: predicated region fallthrough
CT: control target
= control target key end

     0   :  { %v292_v2 = vmov 0   ;;  %vm92_vm0 = vcmask 523264   ;;  %s367_s0 = inlined_call_operand.vmem [shape: bf16[64,32], index: 0, kind: input, shape index: {}]   ;;  %s368_s1 = inlined_call_operand.vmem [shape: bf16[32,64], index: 1, kind: input, shape index: {}]   ;;  %s369_s2 = inlined_call_operand.vmem [shape: f32[32,1], index: 2, kind: input, shape index: {}]   ;;  %s370_s3 = inlined_call_operand.vmem [shape: bf16[8,32], index: 3, kind: input, shape index: {}]   ;;  %s371_s4 = inlined_call_operand.vmem [shape: f32[8,1], index: 4, kind: input, shape index: {}]   ;;  %s372_s5 = inlined_call_operand.hbm [shape: f32[8,32], index: 5, kind: output, shape index: {}]  }
   0x1   :  { %v264_v0 = vld [vmem:[%s367_s0 + $0x18] sm:$0xff]   ;;  %v265_v1 = vld [vmem:[%s367_s0 + $0x10] sm:$0xff]   ;;  %262 = vset.pattern.permute.xlu0 %v292_v2  ;;  %v266_v3 = vld [vmem:[%s367_s0 + $0x8] sm:$0xff]   ;;  %263 = vset.pattern.permute.xlu1 %v292_v2 }
   0x2   :  { %238 = vmatprep.subr.bf16.mxu0 %v264_v0  ;;  %v268_v4 = vld [vmem:[%s368_s1] sm:$0xff]   ;;  %v36_v5 = vld [vmem:[%s369_s2 + $0x10] sm:$0xff] }
   0x3   :  { %239 = vmatpush3.bf16.msra.mxu0 %v264_v0  ;;  %246 = vmatprep.mubr.msk.bf16.mxu0 %vm92_vm0, %v268_v4  ;;  %v34_v6 = vld [vmem:[%s369_s2] sm:$0xff] }
   0x4   :  { %240 = vmatprep.subr.bf16.mxu0 %v265_v1  ;;  %50 = vperm.xlu0 %262, %v36_v5  }
   0x7   :  { %241 = vmatpush3.bf16.msra.mxu0 %v265_v1 }
   0x8   :  { %10 = vsyncpa [#allocation3], 0  ;;  %242 = vmatprep.subr.bf16.mxu0 %v266_v3  ;;  %v267_v7 = vld [vmem:[%s367_s0] sm:$0xff]   ;;  %v37_v8 = vld [vmem:[%s369_s2 + $0x18] sm:$0xff]  ;;  %40 = vperm.xlu1 %263, %v34_v6   ;;  %v293_v12 = vmov 0.0   ;;  %vm294_vm1 = vmmov 0  }
   0x9   :  { %v35_v9 = vld [vmem:[%s369_s2 + $0x8] sm:$0xff]  ;;  %55 = vperm.xlu0 %262, %v37_v8   ;;  %v155_v10 = vld [vmem:[%s371_s4] sm:$0xff]  ;;  %250 = vmatprep.subr.bf16.mxu1 %v293_v12  ;;  %vm161_vm2 = vcmask 261120   ;;  %s295_s2 = smov [#allocation2]  }
   0xa   :  { %v269_v11 = vld [vmem:[%s368_s1 + $0x8] sm:$0xff]   ;;  %254 = vmatprep.mubr.msk.bf16.mxu1 %vm294_vm1, %v293_v12  ;;  %v152_v31 = vld [vmem:[%s370_s3] sm:$0xf]  ;;  %s212_s4 = sshll.u32 %s295_s2, 4  ;;  %s213_s4 = int_to_ptr.vmem [resolvable:$true] %s212_s4 }
   0xb   :  { %243 = vmatpush3.bf16.msra.mxu0 %v266_v3  ;;  %s270_s15 = scalar_lea.vmem %s213_s4, 128  ;;  %p275_p1 = scmp.lt.s32.totalorder %s213_s4, %s213_s4 }
   0xc   :  { %244 = vmatprep.subr.bf16.mxu0 %v267_v7  ;;  %45 = vperm.xlu1 %263, %v35_v9   ;;  %p271_p0 = scmp.ne.s32.totalorder %s213_s4, %s270_s15  ;;  %p276_p2 = scmp.lt.s32.totalorder %s270_s15, %s270_s15 }
   0xd   :  { %158 = vperm.xlu0 %262, %v155_v10  }
   0xe   :  { %p277_p3 = por %p276_p2, %p275_p1 }
   0xf   :  { %245 = vmatpush3.bf16.msra.mxu0 %v267_v7 }
  0x10   :  { %p278_p4 = pnand %p277_p3, %p271_p0 }
  0x12   :  { %247 = vmatmul.mubr.msk.bf16.vlgmr.msra.gmra.mxu0 %vm92_vm0, %v269_v11 }
  0x7f   :  { %v51_v13 = vpop.permute.xlu0 %50 }
  0x83   :  { %v41_v14 = vpop.permute.xlu1 %40 }
  0x84   :  { %v56_v18 = vpop.permute.xlu0 %55 }
  0x87   :  { %v46_v21 = vpop.permute.xlu1 %45 }
  0x88   :  { %v159_v32 = vpop.permute.xlu0 %158 }
  0xd2   :  { %v248_v15 = vpop.f32.mrf.mxu0 }
  0xd3   :  { %v142_v17 = vadd.f32 %v248_v15, %v51_v13 }
  0xd4   :  { %v133_v16 = vpop.f32.mrf.mxu0 }
  0xd5   :  { %v150_v23 = vmax.f32 %v142_v17, 0.0  ;;  %v134_v24 = vadd.f32 %v133_v16, %v41_v14 }
  0xd6   :  { %v249_v19 = vpop.f32.mrf.mxu0 }
  0xd7   :  { %v145_v20 = vadd.f32 %v249_v19, %v56_v18  ;;  %v148_v29 = vmax.f32 %v134_v24, 0.0 }
  0xd8   :  { %v136_v22 = vpop.f32.mrf.mxu0 }
  0xd9   :  { %v151_v25 = vmax.f32 %v145_v20, 0.0  ;;  %v137_v26 = vadd.f32 %v136_v22, %v46_v21 }
  0xdb   :  { %v149_v27 = vmax.f32 %v137_v26, 0.0  ;;  %v154_v28 = vpack.c.bf16 %v151_v25, %v150_v23 }
  0xdd   :  { %251 = vmatpush3.bf16.msra.mxu1 %v154_v28  ;;  %v153_v30 = vpack.c.bf16 %v149_v27, %v148_v29 }
  0xde   :  { %252 = vmatprep.subr.bf16.mxu1 %v293_v12 }
  0xe1   :  { %253 = vmatpush3.bf16.msra.mxu1 %v153_v30 }
  0xe4   :  { %255 = vmatmul.mubr.msk.bf16.vlgmr.msra.gmra.mxu1 %vm161_vm2, %v152_v31 }
 0x1a4   :  { %v199_v33 = vpop.f32.mrf.mxu1 }
 0x1a5   :  { %v200_v34 = vadd.f32 %v199_v33, %v159_v32 }
 0x1a6   :  { %v256_v35 = vpop.f32.mrf.mxu1 }
 0x1a7   :  { %205 = vst.msk [vmem:[#allocation2] sm:$0xff] %vm161_vm2, %v200_v34 }
 0x1a8   :  { %v202_v36 = vpop.f32.mrf.mxu1 }
 0x1a9   :  { %281 = shalt.err (!%p278_p4)
}
 0x1aa   :  { %215 = dma.vmem_to_hbm [thread:$0]  %s213_s4, 128, %s372_s5, [#allocation3]   ;;  %v257_v37 = vpop.f32.mrf.mxu1 }
 0x1ab   :  { %290 = dma.done.wait [#allocation3], 128  }
 0x1ac   :  { %291 = vsyncadd [#allocation3], 4294967168 }
 0x1ad   :  { %219 = vsyncpa [#allocation3], 1 }

</bundles_post_ra>
